<compile_context>
chip_gen: v7x
topology: tpu7x:2x2x1
jax: 0.10.0
libtpu: 0.0.40
codegen_flags: <defaults>
</compile_context>

<pallas_src>
import jax
import jax.numpy as jnp
import numpy as np
from jax.experimental import pallas as pl
from jax.experimental.pallas import tpu as pltpu

GATE_HIDDEN = 16  # GroupUnit.fc1 output channels


def group_unit_chain_kernel(x_ref, w1_ref, b1_ref, w2_ref, b2_ref,
                            fc1w_ref, fc1b_ref, fc2w_ref, fc2b_ref,
                            out_ref, gates_ref):
    """One grid step processes a (B, C, S) batch tile through all L units.

    x_ref    : (B, C, S)   activations, S = H*W on the lane axis (lane-dense)
    w1/w2    : (L, C, C)   1x1-conv weights (out, in)
    b1/b2    : (L, C, 1)   biases (broadcast over lanes)
    fc1w     : (L, C, 16)  gate head layer 1
    fc1b     : (L, 1, 16)
    fc2w     : (L, 16, 2)  gate head layer 2 (temperature pre-folded)
    fc2b     : (L, 1, 2)
    out_ref  : (B, C, S)   also used as the VMEM-resident activation carrier
    gates_ref: (B, L, 2)   gate probabilities per sample / unit
    """
    bsz = x_ref.shape[0]
    n_units = w1_ref.shape[0]

    # Activations live in out_ref (VMEM) across the fused chain of units.
    out_ref[...] = x_ref[...]

    for l in range(n_units):                       # static unroll over units
        xc = out_ref[...]                          # (B, C, S) current activations

        # ---- gate head: GAP -> fc1 -> ReLU -> fc2 -> sigmoid(l1 - l0) ----
        gap = jnp.mean(xc, axis=2)                                    # (B, C)
        z = jnp.maximum(
            jnp.dot(gap, fc1w_ref[l], preferred_element_type=jnp.float32)
            + fc1b_ref[l], 0.0)                                       # (B, 16)
        logits = jnp.dot(z, fc2w_ref[l],
                         preferred_element_type=jnp.float32) + fc2b_ref[l]  # (B, 2)
        # 2-class softmax == sigmoid of the logit difference.
        d = logits[:, 0:1] - logits[:, 1:2]                           # (B, 1)
        gate_on = 1.0 / (1.0 + jnp.exp(d))                            # (B, 1)
        gates_ref[:, l, 0:1] = 1.0 - gate_on
        gates_ref[:, l, 1:2] = gate_on

        # ---- 1x1-conv bottleneck + gated residual (per sample, lane-dense) ----
        w1l, b1l = w1_ref[l], b1_ref[l]                               # (C,C), (C,1)
        w2l, b2l = w2_ref[l], b2_ref[l]
        for b in range(bsz):                        # static unroll over batch tile
            xb = xc[b]                                                # (C, S)
            h = jnp.maximum(
                jnp.dot(w1l, xb, preferred_element_type=jnp.float32) + b1l, 0.0)
            yb = jnp.dot(w2l, h, preferred_element_type=jnp.float32) + b2l
            out_ref[b] = xb + gate_on[b, 0] * yb


def group_unit_chain(x_nchw, blocks, temperature=1.0, batch_tile=2):
    """x_nchw: (N, C, H, W) float32. Returns (out (N,C,H,W), [gate probs (N,2)])."""
    n, c, hh, ww = x_nchw.shape
    s = hh * ww
    num_units = len(blocks)
    x = x_nchw.reshape(n, c, s)                     # free reshape, NCHW kept

    bsz = batch_tile if (n % batch_tile == 0) else 1

    f32 = jnp.float32
    inv_t = 1.0 / float(temperature)                # fold temperature into fc2
    w1 = jnp.stack([p["w1"] for p in blocks]).astype(f32)              # (L,C,C)
    b1 = jnp.stack([p["b1"] for p in blocks]).astype(f32)              # (L,C,1)
    w2 = jnp.stack([p["w2"] for p in blocks]).astype(f32)              # (L,C,C)
    b2 = jnp.stack([p["b2"] for p in blocks]).astype(f32)              # (L,C,1)
    fc1w = jnp.stack([p["fc1_w"] for p in blocks]).astype(f32)         # (L,C,16)
    fc1b = jnp.stack([p["fc1_b"] for p in blocks]).astype(f32)         # (L,1,16)
    fc2w = jnp.stack([p["fc2_w"] for p in blocks]).astype(f32) * inv_t # (L,16,2)
    fc2b = jnp.stack([p["fc2_b"] for p in blocks]).astype(f32) * inv_t # (L,1,2)

    grid_spec = pltpu.PrefetchScalarGridSpec(
        num_scalar_prefetch=0,
        grid=(n // bsz,),
        in_specs=[
            pl.BlockSpec((bsz, c, s), lambda i: (i, 0, 0)),            # x
            pl.BlockSpec((num_units, c, c), lambda i: (0, 0, 0)),      # w1
            pl.BlockSpec((num_units, c, 1), lambda i: (0, 0, 0)),      # b1
            pl.BlockSpec((num_units, c, c), lambda i: (0, 0, 0)),      # w2
            pl.BlockSpec((num_units, c, 1), lambda i: (0, 0, 0)),      # b2
            pl.BlockSpec((num_units, c, GATE_HIDDEN), lambda i: (0, 0, 0)),
            pl.BlockSpec((num_units, 1, GATE_HIDDEN), lambda i: (0, 0, 0)),
            pl.BlockSpec((num_units, GATE_HIDDEN, 2), lambda i: (0, 0, 0)),
            pl.BlockSpec((num_units, 1, 2), lambda i: (0, 0, 0)),
        ],
        out_specs=[
            pl.BlockSpec((bsz, c, s), lambda i: (i, 0, 0)),            # out
            pl.BlockSpec((bsz, num_units, 2), lambda i: (i, 0, 0)),    # gates
        ],
    )

    out, gates = pl.pallas_call(
        group_unit_chain_kernel,
        grid_spec=grid_spec,
        out_shape=(
            jax.ShapeDtypeStruct((n, c, s), jnp.float32),
            jax.ShapeDtypeStruct((n, num_units, 2), jnp.float32),
        ),
        compiler_params=pltpu.CompilerParams(
            dimension_semantics=("parallel",)),
    )(x, w1, b1, w2, b2, fc1w, fc1b, fc2w, fc2b)

    out_nchw = out.reshape(n, c, hh, ww)
    gate_list = [gates[:, l, :] for l in range(num_units)]
    return out_nchw, gate_list


# -------- pure-JAX reference (for correctness checking only) --------
def _group_unit_chain_ref(x_nchw, blocks, temperature=1.0):
    n, c, hh, ww = x_nchw.shape
    x = x_nchw.reshape(n, c, hh * ww).astype(jnp.float32)
    gates = []
    for p in blocks:
        gap = x.mean(axis=2)                                           # (N, C)
        z = jnp.maximum(gap @ p["fc1_w"] + p["fc1_b"][0], 0.0)         # (N, 16)
        logits = (z @ p["fc2_w"] + p["fc2_b"][0]) / temperature        # (N, 2)
        probs = jax.nn.softmax(logits, axis=-1)
        g = probs[:, 1][:, None, None]                                 # (N, 1, 1)
        h = jnp.maximum(jnp.einsum("oc,ncs->nos", p["w1"], x) + p["b1"], 0.0)
        y = jnp.einsum("oc,ncs->nos", p["w2"], h) + p["b2"]
        x = x + g * y
        gates.append(probs)
    return x.reshape(n, c, hh, ww), gates


def make_block_params(key, c):
    k1, k2, k3, k4 = jax.random.split(key, 4)
    return {
        "w1": jax.random.normal(k1, (c, c), jnp.float32) * 0.1,
        "b1": jnp.zeros((c, 1), jnp.float32),
        "w2": jax.random.normal(k2, (c, c), jnp.float32) * 0.1,
        "b2": jnp.zeros((c, 1), jnp.float32),
        "fc1_w": jax.random.normal(k3, (c, GATE_HIDDEN), jnp.float32) * 0.1,
        "fc1_b": jnp.zeros((1, GATE_HIDDEN), jnp.float32),
        "fc2_w": jax.random.normal(k4, (GATE_HIDDEN, 2), jnp.float32) * 0.1,
        # GroupUnit: fc2.bias.data[0] = 0.1, fc2.bias.data[1] = 2
        "fc2_b": jnp.array([[0.1, 2.0]], jnp.float32),
    }


if __name__ == "__main__":
    key = jax.random.PRNGKey(0)
    kx, kp0, kp1 = jax.random.split(key, 3)

    # NCHW input; H*W = 256 puts the spatial axis lane-dense on the TPU.
    N, C, H, W = 4, 16, 16, 16
    temperature = 1.0

    x_nchw = jax.random.normal(kx, (N, C, H, W), jnp.float32)
    blocks = [make_block_params(kp0, C), make_block_params(kp1, C)]

    out, gates = group_unit_chain(x_nchw, blocks, temperature, batch_tile=2)
    out = jax.block_until_ready(out)
    gates = [jax.block_until_ready(g) for g in gates]

    out_ref, gates_ref = _group_unit_chain_ref(x_nchw, blocks, temperature)
    np.testing.assert_allclose(np.asarray(out), np.asarray(out_ref),
                               rtol=1e-5, atol=1e-5)
    for g, gr in zip(gates, gates_ref):
        np.testing.assert_allclose(np.asarray(g), np.asarray(gr),
                                   rtol=1e-5, atol=1e-5)

    print("KERNEL_OK")
</pallas_src>

<mosaic_0001>
module attributes {stable_mosaic.version = 11 : i64} {
  func.func @group_unit_chain_kernel(%arg0: i32, %arg1: memref<2x16x256xf32, #tpu.memory_space<vmem>>, %arg2: memref<2x16x16xf32, #tpu.memory_space<vmem>>, %arg3: memref<2x16x1xf32, #tpu.memory_space<vmem>>, %arg4: memref<2x16x16xf32, #tpu.memory_space<vmem>>, %arg5: memref<2x16x1xf32, #tpu.memory_space<vmem>>, %arg6: memref<2x16x16xf32, #tpu.memory_space<vmem>>, %arg7: memref<2x1x16xf32, #tpu.memory_space<vmem>>, %arg8: memref<2x16x2xf32, #tpu.memory_space<vmem>>, %arg9: memref<2x1x2xf32, #tpu.memory_space<vmem>>, %arg10: memref<2x16x256xf32, #tpu.memory_space<vmem>>, %arg11: memref<2x2x2xf32, #tpu.memory_space<vmem>>) attributes {dimension_semantics = [#tpu.dimension_semantics<parallel>], iteration_bounds = array<i64: 2>, scalar_prefetch = 0 : i64, scratch_operands = 0 : i64, tpu.core_type = #tpu.core_type<tc>, window_params = [{transform_indices = @transform_0, window_bounds = array<i64: 2, 16, 256>}, {pipeline_mode = #tpu.pipeline_mode<synchronous>, transform_indices = @transform_1, window_bounds = array<i64: 2, 16, 16>}, {pipeline_mode = #tpu.pipeline_mode<synchronous>, transform_indices = @transform_2, window_bounds = array<i64: 2, 16, 1>}, {pipeline_mode = #tpu.pipeline_mode<synchronous>, transform_indices = @transform_3, window_bounds = array<i64: 2, 16, 16>}, {pipeline_mode = #tpu.pipeline_mode<synchronous>, transform_indices = @transform_4, window_bounds = array<i64: 2, 16, 1>}, {pipeline_mode = #tpu.pipeline_mode<synchronous>, transform_indices = @transform_5, window_bounds = array<i64: 2, 16, 16>}, {pipeline_mode = #tpu.pipeline_mode<synchronous>, transform_indices = @transform_6, window_bounds = array<i64: 2, 1, 16>}, {pipeline_mode = #tpu.pipeline_mode<synchronous>, transform_indices = @transform_7, window_bounds = array<i64: 2, 16, 2>}, {pipeline_mode = #tpu.pipeline_mode<synchronous>, transform_indices = @transform_8, window_bounds = array<i64: 2, 1, 2>}, {transform_indices = @transform_9, window_bounds = array<i64: 2, 16, 256>}, {transform_indices = @transform_10, window_bounds = array<i64: 2, 2, 2>}]} {
    %c0 = arith.constant 0 : index
    %c0_0 = arith.constant 0 : index
    %c0_1 = arith.constant 0 : index
    %0 = vector.load %arg1[%c0, %c0_0, %c0_1] : memref<2x16x256xf32, #tpu.memory_space<vmem>>, vector<2x16x256xf32>
    %c0_2 = arith.constant 0 : index
    %c0_3 = arith.constant 0 : index
    %c0_4 = arith.constant 0 : index
    %1 = vector.load %arg10[%c0_2, %c0_3, %c0_4] : memref<2x16x256xf32, #tpu.memory_space<vmem>>, vector<2x16x256xf32>
    tpu.vector_store %arg10[%c0_2, %c0_3, %c0_4], %0 {strides = array<i32>} : memref<2x16x256xf32, #tpu.memory_space<vmem>>, vector<2x16x256xf32>,
    %c0_5 = arith.constant 0 : index
    %c0_6 = arith.constant 0 : index
    %c0_7 = arith.constant 0 : index
    %2 = vector.load %arg10[%c0_5, %c0_6, %c0_7] : memref<2x16x256xf32, #tpu.memory_space<vmem>>, vector<2x16x256xf32>
    %cst = arith.constant dense<0.000000e+00> : vector<2x16xf32>
    %3 = vector.multi_reduction <add>, %2, %cst [2] : vector<2x16x256xf32> to vector<2x16xf32>
    %cst_8 = arith.constant 2.560000e+02 : f32
    %4 = vector.broadcast %cst_8 : f32 to vector<2x16xf32>
    %5 = arith.divf %3, %4 : vector<2x16xf32>
    %c0_9 = arith.constant 0 : index
    %c0_10 = arith.constant 0 : index
    %c0_11 = arith.constant 0 : index
    %6 = vector.load %arg6[%c0_9, %c0_10, %c0_11] : memref<2x16x16xf32, #tpu.memory_space<vmem>>, vector<1x16x16xf32>
    %7 = vector.shape_cast %6 : vector<1x16x16xf32> to vector<16x16xf32>
    %cst_12 = arith.constant dense<0.000000e+00> : vector<2x16xf32>
    %8 = tpu.matmul %5, %7, %cst_12 {dimension_numbers = #tpu.dot_dimension_numbers<[1], [0], [0], [1], [0, 0, 1, 1], [], []>} : vector<2x16xf32>, vector<16x16xf32>, vector<2x16xf32> -> vector<2x16xf32>
    %c0_13 = arith.constant 0 : index
    %c0_14 = arith.constant 0 : index
    %c0_15 = arith.constant 0 : index
    %9 = vector.load %arg7[%c0_13, %c0_14, %c0_15] : memref<2x1x16xf32, #tpu.memory_space<vmem>>, vector<1x1x16xf32>
    %10 = vector.shape_cast %9 : vector<1x1x16xf32> to vector<1x16xf32>
    %11 = vector.broadcast %10 : vector<1x16xf32> to vector<2x16xf32>
    %12 = arith.addf %8, %11 : vector<2x16xf32>
    %cst_16 = arith.constant 0.000000e+00 : f32
    %13 = vector.broadcast %cst_16 : f32 to vector<2x16xf32>
    %14 = arith.maximumf %12, %13 : vector<2x16xf32>
    %c0_17 = arith.constant 0 : index
    %c0_18 = arith.constant 0 : index
    %c0_19 = arith.constant 0 : index
    %15 = vector.load %arg8[%c0_17, %c0_18, %c0_19] : memref<2x16x2xf32, #tpu.memory_space<vmem>>, vector<1x16x2xf32>
    %16 = vector.shape_cast %15 : vector<1x16x2xf32> to vector<16x2xf32>
    %cst_20 = arith.constant dense<0.000000e+00> : vector<2x2xf32>
    %17 = tpu.matmul %14, %16, %cst_20 {dimension_numbers = #tpu.dot_dimension_numbers<[1], [0], [0], [1], [0, 0, 1, 1], [], []>} : vector<2x16xf32>, vector<16x2xf32>, vector<2x2xf32> -> vector<2x2xf32>
    %c0_21 = arith.constant 0 : index
    %c0_22 = arith.constant 0 : index
    %c0_23 = arith.constant 0 : index
    %18 = vector.load %arg9[%c0_21, %c0_22, %c0_23] : memref<2x1x2xf32, #tpu.memory_space<vmem>>, vector<1x1x2xf32>
    %19 = vector.shape_cast %18 : vector<1x1x2xf32> to vector<1x2xf32>
    %20 = vector.broadcast %19 : vector<1x2xf32> to vector<2x2xf32>
    %21 = arith.addf %17, %20 : vector<2x2xf32>
    %22 = vector.extract_strided_slice %21 {offsets = [0, 0], sizes = [2, 1], strides = [1, 1]} : vector<2x2xf32> to vector<2x1xf32>
    %23 = vector.extract_strided_slice %21 {offsets = [0, 1], sizes = [2, 1], strides = [1, 1]} : vector<2x2xf32> to vector<2x1xf32>
    %24 = arith.subf %22, %23 : vector<2x1xf32>
    %25 = math.exp %24 : vector<2x1xf32>
    %cst_24 = arith.constant 1.000000e+00 : f32
    %26 = vector.broadcast %cst_24 : f32 to vector<2x1xf32>
    %27 = arith.addf %26, %25 : vector<2x1xf32>
    %cst_25 = arith.constant 1.000000e+00 : f32
    %28 = vector.broadcast %cst_25 : f32 to vector<2x1xf32>
    %29 = arith.divf %28, %27 : vector<2x1xf32>
    %cst_26 = arith.constant 1.000000e+00 : f32
    %30 = vector.broadcast %cst_26 : f32 to vector<2x1xf32>
    %31 = arith.subf %30, %29 : vector<2x1xf32>
    %c0_27 = arith.constant 0 : index
    %c0_28 = arith.constant 0 : index
    %c0_29 = arith.constant 0 : index
    %32 = vector.load %arg11[%c0_27, %c0_28, %c0_29] : memref<2x2x2xf32, #tpu.memory_space<vmem>>, vector<2x1x1xf32>
    %33 = vector.shape_cast %32 : vector<2x1x1xf32> to vector<2x1xf32>
    %34 = vector.shape_cast %31 : vector<2x1xf32> to vector<2x1x1xf32>
    tpu.vector_store %arg11[%c0_27, %c0_28, %c0_29], %34 {strides = array<i32>} : memref<2x2x2xf32, #tpu.memory_space<vmem>>, vector<2x1x1xf32>,
    %c0_30 = arith.constant 0 : index
    %c0_31 = arith.constant 0 : index
    %c1 = arith.constant 1 : index
    %35 = vector.load %arg11[%c0_30, %c0_31, %c1] : memref<2x2x2xf32, #tpu.memory_space<vmem>>, vector<2x1x1xf32>
    %36 = vector.shape_cast %35 : vector<2x1x1xf32> to vector<2x1xf32>
    %37 = vector.shape_cast %29 : vector<2x1xf32> to vector<2x1x1xf32>
    tpu.vector_store %arg11[%c0_30, %c0_31, %c1], %37 {strides = array<i32>} : memref<2x2x2xf32, #tpu.memory_space<vmem>>, vector<2x1x1xf32>,
    %c0_32 = arith.constant 0 : index
    %c0_33 = arith.constant 0 : index
    %c0_34 = arith.constant 0 : index
    %38 = vector.load %arg2[%c0_32, %c0_33, %c0_34] : memref<2x16x16xf32, #tpu.memory_space<vmem>>, vector<1x16x16xf32>
    %39 = vector.shape_cast %38 : vector<1x16x16xf32> to vector<16x16xf32>
    %c0_35 = arith.constant 0 : index
    %c0_36 = arith.constant 0 : index
    %c0_37 = arith.constant 0 : index
    %40 = vector.load %arg3[%c0_35, %c0_36, %c0_37] : memref<2x16x1xf32, #tpu.memory_space<vmem>>, vector<1x16x1xf32>
    %41 = vector.shape_cast %40 : vector<1x16x1xf32> to vector<16x1xf32>
    %c0_38 = arith.constant 0 : index
    %c0_39 = arith.constant 0 : index
    %c0_40 = arith.constant 0 : index
    %42 = vector.load %arg4[%c0_38, %c0_39, %c0_40] : memref<2x16x16xf32, #tpu.memory_space<vmem>>, vector<1x16x16xf32>
    %43 = vector.shape_cast %42 : vector<1x16x16xf32> to vector<16x16xf32>
    %c0_41 = arith.constant 0 : index
    %c0_42 = arith.constant 0 : index
    %c0_43 = arith.constant 0 : index
    %44 = vector.load %arg5[%c0_41, %c0_42, %c0_43] : memref<2x16x1xf32, #tpu.memory_space<vmem>>, vector<1x16x1xf32>
    %45 = vector.shape_cast %44 : vector<1x16x1xf32> to vector<16x1xf32>
    %46 = vector.extract_strided_slice %2 {offsets = [0, 0, 0], sizes = [1, 16, 256], strides = [1, 1, 1]} : vector<2x16x256xf32> to vector<1x16x256xf32>
    %47 = vector.shape_cast %46 : vector<1x16x256xf32> to vector<16x256xf32>
    %cst_44 = arith.constant dense<0.000000e+00> : vector<16x256xf32>
    %48 = tpu.matmul %39, %47, %cst_44 {dimension_numbers = #tpu.dot_dimension_numbers<[1], [0], [0], [1], [0, 0, 1, 1], [], []>} : vector<16x16xf32>, vector<16x256xf32>, vector<16x256xf32> -> vector<16x256xf32>
    %49 = vector.broadcast %41 : vector<16x1xf32> to vector<16x256xf32>
    %50 = arith.addf %48, %49 : vector<16x256xf32>
    %cst_45 = arith.constant 0.000000e+00 : f32
    %51 = vector.broadcast %cst_45 : f32 to vector<16x256xf32>
    %52 = arith.maximumf %50, %51 : vector<16x256xf32>
    %cst_46 = arith.constant dense<0.000000e+00> : vector<16x256xf32>
    %53 = tpu.matmul %43, %52, %cst_46 {dimension_numbers = #tpu.dot_dimension_numbers<[1], [0], [0], [1], [0, 0, 1, 1], [], []>} : vector<16x16xf32>, vector<16x256xf32>, vector<16x256xf32> -> vector<16x256xf32>
    %54 = vector.broadcast %45 : vector<16x1xf32> to vector<16x256xf32>
    %55 = arith.addf %53, %54 : vector<16x256xf32>
    %56 = vector.extract_strided_slice %29 {offsets = [0, 0], sizes = [1, 1], strides = [1, 1]} : vector<2x1xf32> to vector<1x1xf32>
    %57 = vector.extract %56[0, 0] : f32 from vector<1x1xf32>
    %58 = vector.broadcast %57 : f32 to vector<16x256xf32>
    %59 = arith.mulf %58, %55 : vector<16x256xf32>
    %60 = arith.addf %47, %59 : vector<16x256xf32>
    %c0_47 = arith.constant 0 : index
    %c0_48 = arith.constant 0 : index
    %c0_49 = arith.constant 0 : index
    %61 = vector.load %arg10[%c0_47, %c0_48, %c0_49] : memref<2x16x256xf32, #tpu.memory_space<vmem>>, vector<1x16x256xf32>
    %62 = vector.shape_cast %61 : vector<1x16x256xf32> to vector<16x256xf32>
    %63 = vector.shape_cast %60 : vector<16x256xf32> to vector<1x16x256xf32>
    tpu.vector_store %arg10[%c0_47, %c0_48, %c0_49], %63 {strides = array<i32>} : memref<2x16x256xf32, #tpu.memory_space<vmem>>, vector<1x16x256xf32>,
    %64 = vector.extract_strided_slice %2 {offsets = [1, 0, 0], sizes = [1, 16, 256], strides = [1, 1, 1]} : vector<2x16x256xf32> to vector<1x16x256xf32>
    %65 = vector.shape_cast %64 : vector<1x16x256xf32> to vector<16x256xf32>
    %cst_50 = arith.constant dense<0.000000e+00> : vector<16x256xf32>
    %66 = tpu.matmul %39, %65, %cst_50 {dimension_numbers = #tpu.dot_dimension_numbers<[1], [0], [0], [1], [0, 0, 1, 1], [], []>} : vector<16x16xf32>, vector<16x256xf32>, vector<16x256xf32> -> vector<16x256xf32>
    %67 = vector.broadcast %41 : vector<16x1xf32> to vector<16x256xf32>
    %68 = arith.addf %66, %67 : vector<16x256xf32>
    %cst_51 = arith.constant 0.000000e+00 : f32
    %69 = vector.broadcast %cst_51 : f32 to vector<16x256xf32>
    %70 = arith.maximumf %68, %69 : vector<16x256xf32>
    %cst_52 = arith.constant dense<0.000000e+00> : vector<16x256xf32>
    %71 = tpu.matmul %43, %70, %cst_52 {dimension_numbers = #tpu.dot_dimension_numbers<[1], [0], [0], [1], [0, 0, 1, 1], [], []>} : vector<16x16xf32>, vector<16x256xf32>, vector<16x256xf32> -> vector<16x256xf32>
    %72 = vector.broadcast %45 : vector<16x1xf32> to vector<16x256xf32>
    %73 = arith.addf %71, %72 : vector<16x256xf32>
    %74 = vector.extract_strided_slice %29 {offsets = [1, 0], sizes = [1, 1], strides = [1, 1]} : vector<2x1xf32> to vector<1x1xf32>
    %75 = vector.extract %74[0, 0] : f32 from vector<1x1xf32>
    %76 = vector.broadcast %75 : f32 to vector<16x256xf32>
    %77 = arith.mulf %76, %73 : vector<16x256xf32>
    %78 = arith.addf %65, %77 : vector<16x256xf32>
    %c1_53 = arith.constant 1 : index
    %c0_54 = arith.constant 0 : index
    %c0_55 = arith.constant 0 : index
    %79 = vector.load %arg10[%c1_53, %c0_54, %c0_55] : memref<2x16x256xf32, #tpu.memory_space<vmem>>, vector<1x16x256xf32>
    %80 = vector.shape_cast %79 : vector<1x16x256xf32> to vector<16x256xf32>
    %81 = vector.shape_cast %78 : vector<16x256xf32> to vector<1x16x256xf32>
    tpu.vector_store %arg10[%c1_53, %c0_54, %c0_55], %81 {strides = array<i32>} : memref<2x16x256xf32, #tpu.memory_space<vmem>>, vector<1x16x256xf32>,
    %c0_56 = arith.constant 0 : index
    %c0_57 = arith.constant 0 : index
    %c0_58 = arith.constant 0 : index
    %82 = vector.load %arg10[%c0_56, %c0_57, %c0_58] : memref<2x16x256xf32, #tpu.memory_space<vmem>>, vector<2x16x256xf32>
    %cst_59 = arith.constant dense<0.000000e+00> : vector<2x16xf32>
    %83 = vector.multi_reduction <add>, %82, %cst_59 [2] : vector<2x16x256xf32> to vector<2x16xf32>
    %cst_60 = arith.constant 2.560000e+02 : f32
    %84 = vector.broadcast %cst_60 : f32 to vector<2x16xf32>
    %85 = arith.divf %83, %84 : vector<2x16xf32>
    %c1_61 = arith.constant 1 : index
    %c0_62 = arith.constant 0 : index
    %c0_63 = arith.constant 0 : index
    %86 = vector.load %arg6[%c1_61, %c0_62, %c0_63] : memref<2x16x16xf32, #tpu.memory_space<vmem>>, vector<1x16x16xf32>
    %87 = vector.shape_cast %86 : vector<1x16x16xf32> to vector<16x16xf32>
    %cst_64 = arith.constant dense<0.000000e+00> : vector<2x16xf32>
    %88 = tpu.matmul %85, %87, %cst_64 {dimension_numbers = #tpu.dot_dimension_numbers<[1], [0], [0], [1], [0, 0, 1, 1], [], []>} : vector<2x16xf32>, vector<16x16xf32>, vector<2x16xf32> -> vector<2x16xf32>
    %c1_65 = arith.constant 1 : index
    %c0_66 = arith.constant 0 : index
    %c0_67 = arith.constant 0 : index
    %89 = vector.load %arg7[%c1_65, %c0_66, %c0_67] : memref<2x1x16xf32, #tpu.memory_space<vmem>>, vector<1x1x16xf32>
    %90 = vector.shape_cast %89 : vector<1x1x16xf32> to vector<1x16xf32>
    %91 = vector.broadcast %90 : vector<1x16xf32> to vector<2x16xf32>
    %92 = arith.addf %88, %91 : vector<2x16xf32>
    %cst_68 = arith.constant 0.000000e+00 : f32
    %93 = vector.broadcast %cst_68 : f32 to vector<2x16xf32>
    %94 = arith.maximumf %92, %93 : vector<2x16xf32>
    %c1_69 = arith.constant 1 : index
    %c0_70 = arith.constant 0 : index
    %c0_71 = arith.constant 0 : index
    %95 = vector.load %arg8[%c1_69, %c0_70, %c0_71] : memref<2x16x2xf32, #tpu.memory_space<vmem>>, vector<1x16x2xf32>
    %96 = vector.shape_cast %95 : vector<1x16x2xf32> to vector<16x2xf32>
    %cst_72 = arith.constant dense<0.000000e+00> : vector<2x2xf32>
    %97 = tpu.matmul %94, %96, %cst_72 {dimension_numbers = #tpu.dot_dimension_numbers<[1], [0], [0], [1], [0, 0, 1, 1], [], []>} : vector<2x16xf32>, vector<16x2xf32>, vector<2x2xf32> -> vector<2x2xf32>
    %c1_73 = arith.constant 1 : index
    %c0_74 = arith.constant 0 : index
    %c0_75 = arith.constant 0 : index
    %98 = vector.load %arg9[%c1_73, %c0_74, %c0_75] : memref<2x1x2xf32, #tpu.memory_space<vmem>>, vector<1x1x2xf32>
    %99 = vector.shape_cast %98 : vector<1x1x2xf32> to vector<1x2xf32>
    %100 = vector.broadcast %99 : vector<1x2xf32> to vector<2x2xf32>
    %101 = arith.addf %97, %100 : vector<2x2xf32>
    %102 = vector.extract_strided_slice %101 {offsets = [0, 0], sizes = [2, 1], strides = [1, 1]} : vector<2x2xf32> to vector<2x1xf32>
    %103 = vector.extract_strided_slice %101 {offsets = [0, 1], sizes = [2, 1], strides = [1, 1]} : vector<2x2xf32> to vector<2x1xf32>
    %104 = arith.subf %102, %103 : vector<2x1xf32>
    %105 = math.exp %104 : vector<2x1xf32>
    %cst_76 = arith.constant 1.000000e+00 : f32
    %106 = vector.broadcast %cst_76 : f32 to vector<2x1xf32>
    %107 = arith.addf %106, %105 : vector<2x1xf32>
    %cst_77 = arith.constant 1.000000e+00 : f32
    %108 = vector.broadcast %cst_77 : f32 to vector<2x1xf32>
    %109 = arith.divf %108, %107 : vector<2x1xf32>
    %cst_78 = arith.constant 1.000000e+00 : f32
    %110 = vector.broadcast %cst_78 : f32 to vector<2x1xf32>
    %111 = arith.subf %110, %109 : vector<2x1xf32>
    %c0_79 = arith.constant 0 : index
    %c1_80 = arith.constant 1 : index
    %c0_81 = arith.constant 0 : index
    %112 = vector.load %arg11[%c0_79, %c1_80, %c0_81] : memref<2x2x2xf32, #tpu.memory_space<vmem>>, vector<2x1x1xf32>
    %113 = vector.shape_cast %112 : vector<2x1x1xf32> to vector<2x1xf32>
    %114 = vector.shape_cast %111 : vector<2x1xf32> to vector<2x1x1xf32>
    tpu.vector_store %arg11[%c0_79, %c1_80, %c0_81], %114 {strides = array<i32>} : memref<2x2x2xf32, #tpu.memory_space<vmem>>, vector<2x1x1xf32>,
    %c0_82 = arith.constant 0 : index
    %c1_83 = arith.constant 1 : index
    %c1_84 = arith.constant 1 : index
    %115 = vector.load %arg11[%c0_82, %c1_83, %c1_84] : memref<2x2x2xf32, #tpu.memory_space<vmem>>, vector<2x1x1xf32>
    %116 = vector.shape_cast %115 : vector<2x1x1xf32> to vector<2x1xf32>
    %117 = vector.shape_cast %109 : vector<2x1xf32> to vector<2x1x1xf32>
    tpu.vector_store %arg11[%c0_82, %c1_83, %c1_84], %117 {strides = array<i32>} : memref<2x2x2xf32, #tpu.memory_space<vmem>>, vector<2x1x1xf32>,
    %c1_85 = arith.constant 1 : index
    %c0_86 = arith.constant 0 : index
    %c0_87 = arith.constant 0 : index
    %118 = vector.load %arg2[%c1_85, %c0_86, %c0_87] : memref<2x16x16xf32, #tpu.memory_space<vmem>>, vector<1x16x16xf32>
    %119 = vector.shape_cast %118 : vector<1x16x16xf32> to vector<16x16xf32>
    %c1_88 = arith.constant 1 : index
    %c0_89 = arith.constant 0 : index
    %c0_90 = arith.constant 0 : index
    %120 = vector.load %arg3[%c1_88, %c0_89, %c0_90] : memref<2x16x1xf32, #tpu.memory_space<vmem>>, vector<1x16x1xf32>
    %121 = vector.shape_cast %120 : vector<1x16x1xf32> to vector<16x1xf32>
    %c1_91 = arith.constant 1 : index
    %c0_92 = arith.constant 0 : index
    %c0_93 = arith.constant 0 : index
    %122 = vector.load %arg4[%c1_91, %c0_92, %c0_93] : memref<2x16x16xf32, #tpu.memory_space<vmem>>, vector<1x16x16xf32>
    %123 = vector.shape_cast %122 : vector<1x16x16xf32> to vector<16x16xf32>
    %c1_94 = arith.constant 1 : index
    %c0_95 = arith.constant 0 : index
    %c0_96 = arith.constant 0 : index
    %124 = vector.load %arg5[%c1_94, %c0_95, %c0_96] : memref<2x16x1xf32, #tpu.memory_space<vmem>>, vector<1x16x1xf32>
    %125 = vector.shape_cast %124 : vector<1x16x1xf32> to vector<16x1xf32>
    %126 = vector.extract_strided_slice %82 {offsets = [0, 0, 0], sizes = [1, 16, 256], strides = [1, 1, 1]} : vector<2x16x256xf32> to vector<1x16x256xf32>
    %127 = vector.shape_cast %126 : vector<1x16x256xf32> to vector<16x256xf32>
    %cst_97 = arith.constant dense<0.000000e+00> : vector<16x256xf32>
    %128 = tpu.matmul %119, %127, %cst_97 {dimension_numbers = #tpu.dot_dimension_numbers<[1], [0], [0], [1], [0, 0, 1, 1], [], []>} : vector<16x16xf32>, vector<16x256xf32>, vector<16x256xf32> -> vector<16x256xf32>
    %129 = vector.broadcast %121 : vector<16x1xf32> to vector<16x256xf32>
    %130 = arith.addf %128, %129 : vector<16x256xf32>
    %cst_98 = arith.constant 0.000000e+00 : f32
    %131 = vector.broadcast %cst_98 : f32 to vector<16x256xf32>
    %132 = arith.maximumf %130, %131 : vector<16x256xf32>
    %cst_99 = arith.constant dense<0.000000e+00> : vector<16x256xf32>
    %133 = tpu.matmul %123, %132, %cst_99 {dimension_numbers = #tpu.dot_dimension_numbers<[1], [0], [0], [1], [0, 0, 1, 1], [], []>} : vector<16x16xf32>, vector<16x256xf32>, vector<16x256xf32> -> vector<16x256xf32>
    %134 = vector.broadcast %125 : vector<16x1xf32> to vector<16x256xf32>
    %135 = arith.addf %133, %134 : vector<16x256xf32>
    %136 = vector.extract_strided_slice %109 {offsets = [0, 0], sizes = [1, 1], strides = [1, 1]} : vector<2x1xf32> to vector<1x1xf32>
    %137 = vector.extract %136[0, 0] : f32 from vector<1x1xf32>
    %138 = vector.broadcast %137 : f32 to vector<16x256xf32>
    %139 = arith.mulf %138, %135 : vector<16x256xf32>
    %140 = arith.addf %127, %139 : vector<16x256xf32>
    %c0_100 = arith.constant 0 : index
    %c0_101 = arith.constant 0 : index
    %c0_102 = arith.constant 0 : index
    %141 = vector.load %arg10[%c0_100, %c0_101, %c0_102] : memref<2x16x256xf32, #tpu.memory_space<vmem>>, vector<1x16x256xf32>
    %142 = vector.shape_cast %141 : vector<1x16x256xf32> to vector<16x256xf32>
    %143 = vector.shape_cast %140 : vector<16x256xf32> to vector<1x16x256xf32>
    tpu.vector_store %arg10[%c0_100, %c0_101, %c0_102], %143 {strides = array<i32>} : memref<2x16x256xf32, #tpu.memory_space<vmem>>, vector<1x16x256xf32>,
    %144 = vector.extract_strided_slice %82 {offsets = [1, 0, 0], sizes = [1, 16, 256], strides = [1, 1, 1]} : vector<2x16x256xf32> to vector<1x16x256xf32>
    %145 = vector.shape_cast %144 : vector<1x16x256xf32> to vector<16x256xf32>
    %cst_103 = arith.constant dense<0.000000e+00> : vector<16x256xf32>
    %146 = tpu.matmul %119, %145, %cst_103 {dimension_numbers = #tpu.dot_dimension_numbers<[1], [0], [0], [1], [0, 0, 1, 1], [], []>} : vector<16x16xf32>, vector<16x256xf32>, vector<16x256xf32> -> vector<16x256xf32>
    %147 = vector.broadcast %121 : vector<16x1xf32> to vector<16x256xf32>
    %148 = arith.addf %146, %147 : vector<16x256xf32>
    %cst_104 = arith.constant 0.000000e+00 : f32
    %149 = vector.broadcast %cst_104 : f32 to vector<16x256xf32>
    %150 = arith.maximumf %148, %149 : vector<16x256xf32>
    %cst_105 = arith.constant dense<0.000000e+00> : vector<16x256xf32>
    %151 = tpu.matmul %123, %150, %cst_105 {dimension_numbers = #tpu.dot_dimension_numbers<[1], [0], [0], [1], [0, 0, 1, 1], [], []>} : vector<16x16xf32>, vector<16x256xf32>, vector<16x256xf32> -> vector<16x256xf32>
    %152 = vector.broadcast %125 : vector<16x1xf32> to vector<16x256xf32>
    %153 = arith.addf %151, %152 : vector<16x256xf32>
    %154 = vector.extract_strided_slice %109 {offsets = [1, 0], sizes = [1, 1], strides = [1, 1]} : vector<2x1xf32> to vector<1x1xf32>
    %155 = vector.extract %154[0, 0] : f32 from vector<1x1xf32>
    %156 = vector.broadcast %155 : f32 to vector<16x256xf32>
    %157 = arith.mulf %156, %153 : vector<16x256xf32>
    %158 = arith.addf %145, %157 : vector<16x256xf32>
    %c1_106 = arith.constant 1 : index
    %c0_107 = arith.constant 0 : index
    %c0_108 = arith.constant 0 : index
    %159 = vector.load %arg10[%c1_106, %c0_107, %c0_108] : memref<2x16x256xf32, #tpu.memory_space<vmem>>, vector<1x16x256xf32>
    %160 = vector.shape_cast %159 : vector<1x16x256xf32> to vector<16x256xf32>
    %161 = vector.shape_cast %158 : vector<16x256xf32> to vector<1x16x256xf32>
    tpu.vector_store %arg10[%c1_106, %c0_107, %c0_108], %161 {strides = array<i32>} : memref<2x16x256xf32, #tpu.memory_space<vmem>>, vector<1x16x256xf32>,
    return
  }
  func.func @transform_0(%arg0: i32) -> (i32, i32, i32) {
    %c0_i32 = arith.constant 0 : i32
    %c0_i32_0 = arith.constant 0 : i32
    %c0_i32_1 = arith.constant 0 : i32
    return %arg0, %c0_i32, %c0_i32_0 : i32, i32, i32
  }
  func.func @transform_1(%arg0: i32) -> (i32, i32, i32) {
    %c0_i32 = arith.constant 0 : i32
    %c0_i32_0 = arith.constant 0 : i32
    %c0_i32_1 = arith.constant 0 : i32
    %c0_i32_2 = arith.constant 0 : i32
    return %c0_i32, %c0_i32_0, %c0_i32_1 : i32, i32, i32
  }
  func.func @transform_2(%arg0: i32) -> (i32, i32, i32) {
    %c0_i32 = arith.constant 0 : i32
    %c0_i32_0 = arith.constant 0 : i32
    %c0_i32_1 = arith.constant 0 : i32
    %c0_i32_2 = arith.constant 0 : i32
    return %c0_i32, %c0_i32_0, %c0_i32_1 : i32, i32, i32
  }
  func.func @transform_3(%arg0: i32) -> (i32, i32, i32) {
    %c0_i32 = arith.constant 0 : i32
    %c0_i32_0 = arith.constant 0 : i32
    %c0_i32_1 = arith.constant 0 : i32
    %c0_i32_2 = arith.constant 0 : i32
    return %c0_i32, %c0_i32_0, %c0_i32_1 : i32, i32, i32
  }
  func.func @transform_4(%arg0: i32) -> (i32, i32, i32) {
    %c0_i32 = arith.constant 0 : i32
    %c0_i32_0 = arith.constant 0 : i32
    %c0_i32_1 = arith.constant 0 : i32
    %c0_i32_2 = arith.constant 0 : i32
    return %c0_i32, %c0_i32_0, %c0_i32_1 : i32, i32, i32
  }
  func.func @transform_5(%arg0: i32) -> (i32, i32, i32) {
    %c0_i32 = arith.constant 0 : i32
    %c0_i32_0 = arith.constant 0 : i32
    %c0_i32_1 = arith.constant 0 : i32
    %c0_i32_2 = arith.constant 0 : i32
    return %c0_i32, %c0_i32_0, %c0_i32_1 : i32, i32, i32
  }
  func.func @transform_6(%arg0: i32) -> (i32, i32, i32) {
    %c0_i32 = arith.constant 0 : i32
    %c0_i32_0 = arith.constant 0 : i32
    %c0_i32_1 = arith.constant 0 : i32
    %c0_i32_2 = arith.constant 0 : i32
    return %c0_i32, %c0_i32_0, %c0_i32_1 : i32, i32, i32
  }
  func.func @transform_7(%arg0: i32) -> (i32, i32, i32) {
    %c0_i32 = arith.constant 0 : i32
    %c0_i32_0 = arith.constant 0 : i32
    %c0_i32_1 = arith.constant 0 : i32
    %c0_i32_2 = arith.constant 0 : i32
    return %c0_i32, %c0_i32_0, %c0_i32_1 : i32, i32, i32
  }
  func.func @transform_8(%arg0: i32) -> (i32, i32, i32) {
    %c0_i32 = arith.constant 0 : i32
    %c0_i32_0 = arith.constant 0 : i32
    %c0_i32_1 = arith.constant 0 : i32
    %c0_i32_2 = arith.constant 0 : i32
    return %c0_i32, %c0_i32_0, %c0_i32_1 : i32, i32, i32
  }
  func.func @transform_9(%arg0: i32) -> (i32, i32, i32) {
    %c0_i32 = arith.constant 0 : i32
    %c0_i32_0 = arith.constant 0 : i32
    %c0_i32_1 = arith.constant 0 : i32
    return %arg0, %c0_i32, %c0_i32_0 : i32, i32, i32
  }
  func.func @transform_10(%arg0: i32) -> (i32, i32, i32) {
    %c0_i32 = arith.constant 0 : i32
    %c0_i32_0 = arith.constant 0 : i32
    %c0_i32_1 = arith.constant 0 : i32
    return %arg0, %c0_i32, %c0_i32_0 : i32, i32, i32
  }
}

</mosaic_0001>

<bundles_post_ra>
// kernel: tpu_custom_call.1
= control target key start
LH: loop header
LB: loop body
LE: loop exit
PB: predicated region body
PF: predicated region fallthrough
CT: control target
= control target key end

     0   :  { %16 = vsyncpa [#allocation3], 0  ;;  %s2740_s0 = inlined_call_operand.hbm [shape: f32[4,16,256], index: 0, kind: input, shape index: {}]   ;;  %s2741_s1 = inlined_call_operand.vmem [shape: f32[2,16,16], index: 1, kind: input, shape index: {}]   ;;  %s2742_s2 = inlined_call_operand.vmem [shape: f32[2,16,1], index: 2, kind: input, shape index: {}]   ;;  %s2743_s3 = inlined_call_operand.vmem [shape: f32[2,16,16], index: 3, kind: input, shape index: {}]   ;;  %s2744_s4 = inlined_call_operand.vmem [shape: f32[2,16,1], index: 4, kind: input, shape index: {}]   ;;  %s2745_s5 = inlined_call_operand.vmem [shape: f32[2,16,16], index: 5, kind: input, shape index: {}]   ;;  %s2746_s6 = inlined_call_operand.vmem [shape: f32[2,1,16], index: 6, kind: input, shape index: {}]   ;;  %s2747_s7 = inlined_call_operand.vmem [shape: f32[2,16,2], index: 7, kind: input, shape index: {}]   ;;  %s2748_s8 = inlined_call_operand.vmem [shape: f32[2,1,2], index: 8, kind: input, shape index: {}]   ;;  %s2749_s9 = inlined_call_operand.hbm [shape: f32[4,16,256], index: 9, kind: output, shape index: {0}]   ;;  %s2750_s10 = inlined_call_operand.vmem [shape: f32[4,2,2], index: 10, kind: output, shape index: {1}]  }
   0x1   :  { %18 = vsyncpa [#allocation3 + $0x1], 0 }
   0x2   :  { %19 = vsyncpa [#allocation4], 0 }
   0x3   :  { %21 = vsyncpa [#allocation4 + $0x1], 0  ;;  %s2290_s13 = smov 0   ;;  %s2292_s14 = smov 0  }
   0x4   :  { %s2294_s15 = smov 0   ;;  %s2296_s16 = smov 0  }
   0x5 LB: > { %s2311_s17 = sadd.s32 4294967295, %s2220_s16   ;;  %s1897_s18 = sadd.s32 4294967294, %s2220_s16   ;;  %s2220_s16 = sphi %s2296_s16, %s2769_s16   ;;  %s2216_s15 = sphi %s2294_s15, %s2768_s15   ;;  %s2212_s14 = sphi %s2292_s14, %s2767_s14   ;;  %s2208_s13 = sphi %s2290_s13, %s2766_s13  }
   0x6   : > { %s2315_s19 = sadd.s32 1, %s2220_s16   ;;  %s34_s20 = sadd.s32 1, %s2216_s15 }
   0x7   : > { %s31_s21 = ssub.s32 %s2220_s16, %s2315_s19  ;;  %p41_p0 = scmp.ne.s32.totalorder %s2216_s15, %s2212_s14 }
   0x8   : > { %p32_p1 = scmp.eq.s32.totalorder %s31_s21, 0  ;;  %p42_p2 = scmp.eq.s32.totalorder %s2220_s16, 0 }
   0x9   : > { %p47_p3 = scmp.ne.s32.totalorder %s2212_s14, %s2208_s13  ;;  %p48_p4 = scmp.eq.s32.totalorder %s2311_s17, 0 }
   0xa   : > { %s2327_s22 = scalar_select %p32_p1, %s2216_s15, %s34_s20  }
   0xb   : > { %p2329_p5 = por %p42_p2, %p41_p0  ;;  %p2333_p6 = por %p48_p4, %p47_p3 }
   0xc   : > { %2754 = sst [smem:[#allocation8_spill]] %s2327_s22  ;;  %p239_p7 = scmp.eq.s32.totalorder %s2311_s17, 1 }
   0xd   : > { %p245_p8 = scmp.eq.s32.totalorder %s1897_s18, 1  ;;  %p2069_p10 = scmp.lt.s32.totalorder %s2220_s16, 2 }
   0xe   : > { %p2340_p11 = por %p239_p7, %p41_p0  ;;  %s315_s27 = sand.u32 1, %s2216_s15  }
   0xf   : > { %p2344_p12 = por %p245_p8, %p47_p3  ;;  %s1962_s28 = sshll.u32 %s2220_s16, 10 }
  0x10   : > { %s2757_s25 = scalar_select %p2340_p11, 1, 0 }
  0x11   : > { %s2758_s26 = scalar_select %p2344_p12, 1, 0 }
  0x12   : > { %s1900_s29 = sshll.u32 %s315_s27, 6  ;;  %s2353_s12 = scalar_lea.hbm %s2740_s0, %s1962_s28 }
  0x13   : > { %s319_s18 = scalar_lea.vmem [#allocation2], %s1900_s29  ;;  %p2357_p13 = pnand %p2069_p10, %p2329_p5 }
  0x14   : > { %s327_s20 = sshll.u32 %s319_s18, 4  ;;  %s2363_s22 = scalar_lea.sflag [#allocation3], %s315_s27  ;;  %s2361_s20 = int_to_ptr.vmem [resolvable:$true] %s327_s20 }
  0x15   : > { %s2124_s30 = scalar_lea.hbm %s2353_s12, 1024  ;;  %p2126_p1 = pneg %p2357_p13 }
  0x16   : > { %p2125_p0 = scmp.ne.s32.totalorder %s2353_s12, %s2124_s30  ;;  %s2129_s29 = scalar_lea.hbm %s2740_s0, 2048 }
  0x17   : > { %p2130_p4 = scmp.lt.u32.totalorder %s2353_s12, %s2740_s0  ;;  %p2131_p5 = scmp.lt.u32.totalorder %s2129_s29, %s2124_s30 }
  0x18   : > { %p2127_p2 = pnand %p2126_p1, %p2125_p0  ;;  %p2133_p8 = scmp.lt.u32.totalorder %s2124_s30, %s2353_s12 }
  0x19   : > { %p2132_p7 = por %p2131_p5, %p2130_p4 }
  0x1a   : > { %p2128_p3 = pneg %p2127_p2 }
  0x1b   : > { %p2134_p10 = por %p2133_p8, %p2132_p7 }
  0x1d   : > { %p2135_p9 = pnand %p2134_p10, %p2128_p3 }
  0x1f   : > { %2138 = shalt.err (!%p2135_p9)
}
  0x20   : > { %s2139_s27 = scalar_lea.vmem %s2361_s20, 1024  ;;  %s2222_s28 = smov [#allocation2]  }
  0x21   : > { %p2140_p0 = scmp.ne.s32.totalorder %s2361_s20, %s2139_s27  ;;  %s2144_s23 = sshll.u32 %s2222_s28, 4  ;;  %s2145_s23 = int_to_ptr.vmem [resolvable:$false] %s2144_s23 }
  0x22   : > { %s2146_s11 = scalar_lea.vmem %s2145_s23, 2048  ;;  %p2147_p11 = scmp.lt.s32.totalorder %s2361_s20, %s2145_s23 }
  0x23   : > { %p2142_p2 = pnand %p2140_p0, %p2126_p1  ;;  %p2148_p4 = scmp.lt.s32.totalorder %s2146_s11, %s2139_s27 }
  0x25   : > { %p2143_p12 = pneg %p2142_p2  ;;  %p2149_p5 = por %p2148_p4, %p2147_p11 }
  0x27   : > { %p2150_p7 = pnand %p2149_p5, %p2143_p12 }
  0x29   : > { %2153 = shalt.err (!%p2150_p7)
}
  0x2a   : > { %s2223_s30 = smov 256   ;;  %s2224_s29 = smov 16  }
  0x2b   : > { %2064 = dma.hbm_to_vmem [thread:$0]  (!%p2357_p13), %s2353_s12, 1024, %s2361_s20, %s2363_s22, %s2223_s30, %s2223_s30, %s2224_s29  }
  0x2c   : > { %p1904_p9 = scmp.ge.s32.totalorder %s2220_s16, 1  ;;  %p335_p1 = scmp.lt.s32.totalorder %s2220_s16, 3 }
  0x2e   : > { %p336_p3 = pnand %p1904_p9, %p335_p1 }
  0x2f   : > { %s2394_s18 = sand.u32 (!%p336_p3), 1, %s2212_s14  }
  0x30   : > { %339 = sbr.rel (%p336_p3) target bundleno = 1698 (0x6a2), region = 56  ;;  %s2752_s27 = sshll.u32 (!%p336_p3), %s2394_s18, 6 }
  0x31   : > { %s342_s28 = scalar_lea.sflag (!%p336_p3), [#allocation3], %s2394_s18  ;;  %s345_s23 = scalar_lea.vmem (!%p336_p3), [#allocation2], %s2752_s27 }
  0x37   : > { %2199 = dma.done.wait (%p2333_p6), %s342_s28, 1024  }
  0x38   : > { %2201 = vsyncadd (%p2333_p6), %s342_s28, 4294966272  ;;  %v2404_v0 = vld [vmem:[%s345_s23 + $0x20] sm:$0xff]  ;;  %v2406_v1 = vld [vmem:[%s345_s23 + $0x28] sm:$0xff]  ;;  %v2225_v15 = vmov 0.0|0.0   ;;  %vm2226_vm0 = vmmov 0   ;;  %v2227_v16 = vmov 0.0   ;;  %v449_v21 = vlaneseq }
  0x39   : > { %v2408_v2 = vld [vmem:[%s345_s23] sm:$0xff]  ;;  %v425_v3 = vadd.f32 %v2406_v1, %v2404_v0  ;;  %v2412_v4 = vld [vmem:[%s345_s23 + $0x8] sm:$0xff]  ;;  %v2414_v5 = vld [vmem:[%s345_s23 + $0x30] sm:$0xff]  ;;  %2005 = vmatprep.subr.bf16.mxu0 %v2225_v15  ;;  %2008 = vmatprep.subr.bf16.mxu1 %v2225_v15  ;;  %v2228_v20 = vmov 0   ;;  %vm460_vm1 = vcmask 130112   ;;  %vm471_vm2 = vcmask 1041409  }
  0x3a   : > { %v2416_v6 = vld [vmem:[%s345_s23 + $0x38] sm:$0xff]  ;;  %v419_v7 = vadd.f32 %v2412_v4, %v2408_v2  ;;  %v2420_v8 = vld [vmem:[%s345_s23 + $0x10] sm:$0xff]  ;;  %v436_v12 = vld [vmem:[%s2745_s5] sm:$0xff]  ;;  %1981 = vmatprep.mubr.msk.f32.mxu0 %vm2226_vm0, %v2227_v16  ;;  %1988 = vmatprep.mubr.msk.f32.mxu1 %vm2226_vm0, %v2227_v16  ;;  %v450_v22 = vand.u32 127, %v449_v21  ;;  %v2448_v23 = vshrl.u32 %v449_v21, 7  ;;  %vm473_vm3 = vcmask 130048  }
  0x3b   : > { %v2422_v9 = vld [vmem:[%s345_s23 + $0x18] sm:$0xff]  ;;  %426 = vadd.xlane.f32.xlu1 %v425_v3  ;;  %v428_v10 = vadd.f32 %v2416_v6, %v2414_v5  ;;  %v437_v13 = vld [vmem:[%s2745_s5 + $0x8] sm:$0xff]  ;;  %v710_v19 = vld [vmem:[%s2742_s2] sm:$0xff]  ;;  %2114 = vset.pattern.permute.xlu0 %v2228_v20  ;;  %v2013_v40 = vpack.c.bf16 %v2420_v8, %v2408_v2  ;;  %v2019_v42 = vpack.c.bf16 %v2416_v6, %v2406_v1  ;;  %s2753_s21 = smov 127   ;;  %s1907_s20 = sshll.u32 %s2311_s17, 1  ;;  %vm665_vm4 = vcmask 0  }
  0x3c   : > { %420 = vadd.xlane.f32.xlu0 %v419_v7  ;;  %v422_v11 = vadd.f32 %v2422_v9, %v2420_v8  ;;  %v2006_v14 = vpack.c.bf16 %v437_v13, %v436_v12  ;;  %v2011_v17 = vpack.c.bf16 %v2422_v9, %v2412_v4  ;;  %v711_v18 = vld [vmem:[%s2742_s2 + $0x8] sm:$0xff]  ;;  %2115 = vset.pattern.permute.xlu1 %v2228_v20  ;;  %v455_v24 = vadd.s32 4294967288, %v450_v22  ;;  %v708_v44 = vld [vmem:[%s2741_s1] sm:$0xff]  ;;  %p390_p6 = scmp.lt.s32.totalorder %s1907_s20, 3  ;;  %s2760_s24 = smov 127  }
  0x3d   : > { %v2451_v27 = vsub.s32 %v450_v22, %v2448_v23  ;;  %v2021_v45 = vpack.c.bf16 %v2414_v5, %v2404_v0  ;;  %v709_v46 = vld [vmem:[%s2741_s1 + $0x8] sm:$0xff]  ;;  %v547_v47 = vld [vmem:[%s2747_s7] sm:$0xff]  ;;  %vm705_vm5 = vcmask 8200   ;;  %p2762_p12 = scmp.ne.s32.totalorder %s2757_s25, 0 }
  0x3e   : > { %2007 = vmatpush3.bf16.msra.mxu0 %v2006_v14  ;;  %v2454_v29 = vsub.s32 %v455_v24, %v2448_v23  ;;  %v548_v48 = vld [vmem:[%s2747_s7 + $0x8] sm:$0xff]  ;;  %v1909_v50 = vld [vmem:[%s2746_s6] ss:$0 sm:$0xff]  ;;  %s2771_s20 = smov (!%p390_p6, %s1907_s20), 3 }
  0x3f   : > { %429 = vadd.xlane.f32.xlu1 %v428_v10  ;;  %2012 = vmatprep.subr.bf16.mxu0 %v2011_v17  ;;  %v2009_v49 = vpack.c.bf16 %v548_v48, %v547_v47  ;;  %s1908_s11 = sshll.u32 %s2771_s20, 1  ;;  %s1776_s20 = scalar_lea.sflag [#allocation4], %s2394_s18 }
  0x40   : > { %423 = vadd.xlane.f32.xlu0 %v422_v11  ;;  %s2543_s28 = scalar_lea.vmem %s2750_s10, %s1908_s11  ;;  %s2231_s11 = smov 1  }
  0x41   : > { %2010 = vmatpush3.bf16.msra.mxu1 %v2009_v49  ;;  %v1925_v49 = vld [vmem:[%s2745_s5 + $0x10] sm:$0xff] }
  0x50   : > { %723 = vperm.xlu1 %2115, %v711_v18  }
  0x56   : > { %718 = vperm.xlu0 %2114, %v710_v19  }
  0xc8   : > { %v427_v25 = vpop.xlane.xlu1 %426 }
  0xc9   : > { %v421_v26 = vpop.xlane.xlu0 %420  ;;  %v434_v28 = vmul.f32 0.00390625, %v427_v25 }
  0xca   : > { %v432_v30 = vmul.f32 0.00390625, %v421_v26  ;;  %v712_v26 = vld [vmem:[%s2743_s3] sm:$0xff] }
  0xcb   : > { %v465_v35 = vrot.slane %v434_v28, %v2451_v27 }
  0xcc   : > { %v430_v31 = vpop.xlane.xlu1 %429  ;;  %v454_v37 = vrot.slane %v432_v30, %v2451_v27 }
  0xcd   : > { %v435_v32 = vmul.f32 0.00390625, %v430_v31  ;;  %v424_v33 = vpop.xlane.xlu0 %423 }
  0xce   : > { %v433_v34 = vmul.f32 0.00390625, %v424_v33 }
  0xcf   : > { %v469_v36 = vrot.slane %v435_v32, %v2454_v29 }
  0xd0   : > { %v459_v38 = vrot.slane %v433_v34, %v2454_v29  ;;  %v724_v59 = vpop.permute.xlu1 %723  ;;  %v713_v34 = vld [vmem:[%s2743_s3 + $0x8] sm:$0xff] }
  0xd1   : > { %v470_v39 = vsel %vm460_vm1, %v469_v36, %v465_v35  ;;  %v1911_v36 = vld [vmem:[%s2748_s8] ss:$0 sm:$0xff] }
  0xd2   : > { %v461_v41 = vsel %vm460_vm1, %v459_v38, %v454_v37 }
  0xd3   : > { %v472_v43 = vsel %vm471_vm2, %v470_v39, %v461_v41 }
  0xd4   : > { %1982 = vmatmul.mubr.msk.f32.vlgmr.msra.gmra.mrb[0].mxu0 %vm473_vm3, %v472_v43 }
  0xd5   : > { %2014 = vmatpush1.bf16.msra.mxu0 %v2013_v40  ;;  %796 = vmatprep.mubr.f32.mxu0 %v2227_v16  ;;  %v719_v54 = vpop.permute.xlu0 %718  ;;  %v715_v40 = vld [vmem:[%s2744_s4 + $0x8] sm:$0xff] }
  0xd6   : > { %2020 = vmatprep.subr.bf16.mxu0 %v2019_v42 }
  0xd8   : > { %1913 = vmatmul.mubr.msk.f32.vlgmr.msra.gmra.mrb[2].mxu0 %vm473_vm3, %v708_v44 }
  0xd9   : > { %802 = vmatprep.mubr.f32.mxu0 %v2227_v16  ;;  %2022 = vmatpush1.bf16.msra.mxu0 %v2021_v45 }
  0xda   : > { %2027 = vmatprep.subr.bf16.mxu0 %v2225_v15 }
  0xdc   : > { %1914 = vmatmul.mubr.msk.f32.gmra.mrb[4].mxu0 %vm473_vm3, %v709_v46 }
  0xdd   : > { %984 = vmatprep.mubr.f32.mxu0 %v2227_v16 }
  0xe0   : > { %1917 = vmatmul.mubr.msk.f32.vlgmr.msra.gmra.mrb[6].mxu0 %vm473_vm3, %v708_v44 }
  0xe1   : > { %990 = vmatprep.mubr.f32.mxu0 %v2227_v16 }
  0xe4   : > { %1918 = vmatmul.mubr.msk.f32.gmra.mrb[8].mxu0 %vm473_vm3, %v709_v46 }
  0xe5   : > { %1995 = vmatprep.mubr.msk.f32.mxu0 %vm2226_vm0, %v2227_v16 }
 0x1a7   : > { %v542_v51 = vpop.f32.mrb[0].mxu0 }
 0x1a8   : > { %v543_v52 = vadd.f32 %v1909_v50, %v542_v51  ;;  %v1983_v53 = vpop.f32.mrb[1].mxu0  ;;  %v1926_v50 = vld [vmem:[%s2745_s5 + $0x18] sm:$0xff] }
 0x1a9   : > { %v2028_v51 = vpack.c.bf16 %v1926_v50, %v1925_v49 }
 0x1aa   : > { %v546_v55 = vmax.f32 %v543_v52, 0.0 }
 0x1ab   : > { %v798_v56 = vpop.f32.mrb[2].mxu0  ;;  %2029 = vmatpush3.bf16.msra.mxu0 %v2028_v51 }
 0x1ac   : > { %1989 = vmatmul.mubr.msk.f32.vlgmr.msra.gmra.mrb[0].mxu1 %vm473_vm3, %v546_v55  ;;  %v800_v57 = vpop.f32.mrb[3].mxu0  ;;  %v799_v58 = vadd.f32 %v798_v56, %v719_v54 }
 0x1ad   : > { %v801_v60 = vadd.f32 %v800_v57, %v719_v54  ;;  %893 = vmatprep.mubr.f32.mxu1 %v2227_v16  ;;  %v2230_v57 = vmov 1966171168  }
 0x1ae   : > { %v809_v3 = vmax.f32 %v799_v58, 0.0  ;;  %v642_v58 = vunpack.c.l.s4 %v2230_v57 }
 0x1af   : > { %v804_v61 = vpop.f32.mrb[4].mxu0  ;;  %v810_v10 = vmax.f32 %v801_v60, 0.0 }
 0x1b0   : > { %v805_v62 = vadd.f32 %v804_v61, %v724_v59  ;;  %v806_v63 = vpop.f32.mrb[5].mxu0 }
 0x1b1   : > { %v807_v7 = vadd.f32 %v806_v63, %v724_v59 }
 0x1b2   : > { %v811_v11 = vmax.f32 %v805_v62, 0.0 }
 0x1b3   : > { %v812_v12 = vmax.f32 %v807_v7, 0.0  ;;  %v986_v13 = vpop.f32.mrb[6].mxu0 }
 0x1b4   : > { %v987_v14 = vadd.f32 %v986_v13, %v719_v54  ;;  %v988_v17 = vpop.f32.mrb[7].mxu0  ;;  %v2017_v18 = vpack.c.bf16 %v811_v11, %v809_v3 }
 0x1b5   : > { %v989_v19 = vadd.f32 %v988_v17, %v719_v54  ;;  %v2015_v20 = vpack.c.bf16 %v812_v12, %v810_v10 }
 0x1b6   : > { %v997_v22 = vmax.f32 %v987_v14, 0.0 }
 0x1b7   : > { %2016 = vmatprep.subr.bf16.mxu1 %v2015_v20  ;;  %v992_v21 = vpop.f32.mrb[8].mxu0  ;;  %v998_v28 = vmax.f32 %v989_v19, 0.0 }
 0x1b8   : > { %v993_v24 = vadd.f32 %v992_v21, %v724_v59  ;;  %2018 = vmatpush1.bf16.msra.mxu1 %v2017_v18  ;;  %v994_v25 = vpop.f32.mrb[9].mxu0 }
 0x1b9   : > { %v995_v30 = vadd.f32 %v994_v25, %v724_v59  ;;  %v643_v59 = vunpack.c.0.s8 %v642_v58 }
 0x1ba   : > { %v999_v31 = vmax.f32 %v993_v24, 0.0 }
 0x1bb   : > { %v1000_v32 = vmax.f32 %v995_v30, 0.0  ;;  %1915 = vmatmul.mubr.msk.f32.vlgmr.msra.gmra.mrb[2].mxu1 %vm473_vm3, %v712_v26  ;;  %v2534_v61 = vsub.s32 %v643_v59, %v2448_v23 }
 0x1bc   : > { %v2025_v33 = vpack.c.bf16 %v999_v31, %v997_v22  ;;  %899 = vmatprep.mubr.f32.mxu1 %v2227_v16 }
 0x1bd   : > { %v2023_v35 = vpack.c.bf16 %v1000_v32, %v998_v28 }
 0x1bf   : > { %1916 = vmatmul.mubr.msk.f32.gmra.mrb[4].mxu1 %vm473_vm3, %v713_v34  ;;  %2024 = vmatprep.subr.bf16.mxu1 %v2023_v35 }
 0x1c0   : > { %2026 = vmatpush1.bf16.msra.mxu1 %v2025_v33  ;;  %1065 = vmatprep.mubr.f32.mxu1 %v2227_v16 }
 0x1c1   : > { %2030 = vmatprep.subr.bf16.mxu1 %v2225_v15  ;;  %v714_v15 = vld [vmem:[%s2744_s4] sm:$0xff] }
 0x1c3   : > { %1919 = vmatmul.mubr.msk.f32.vlgmr.msra.gmra.mrb[6].mxu1 %vm473_vm3, %v712_v26 }
 0x1c4   : > { %1071 = vmatprep.mubr.f32.mxu1 %v2227_v16 }
 0x1c7   : > { %1920 = vmatmul.mubr.msk.f32.gmra.mrb[8].mxu1 %vm473_vm3, %v713_v34 }
 0x1c8   : > { %2002 = vmatprep.mubr.msk.f32.mxu1 %vm2226_vm0, %v2227_v16 }
 0x27f   : > { %v625_v37 = vpop.f32.mrb[0].mxu1 }
 0x280   : > { %v626_v38 = vadd.f32 %v1911_v36, %v625_v37  ;;  %v1990_v39 = vpop.f32.mrb[1].mxu1 }
 0x282   : > { %630 = vrot.lane.b32.xlu1 %v626_v38, %s2753_s21 }
 0x286   : > { %815 = vperm.xlu1 %2115, %v714_v15  }
 0x28a   : > { %820 = vperm.xlu1 %2115, %v715_v40  }
 0x28e   : > { %v895_v41 = vpop.f32.mrb[2].mxu1 }
 0x28f   : > { %v897_v42 = vpop.f32.mrb[3].mxu1 }
 0x292   : > { %v901_v43 = vpop.f32.mrb[4].mxu1 }
 0x293   : > { %v903_v44 = vpop.f32.mrb[5].mxu1 }
 0x296   : > { %v1067_v45 = vpop.f32.mrb[6].mxu1 }
 0x297   : > { %v1069_v46 = vpop.f32.mrb[7].mxu1 }
 0x29a   : > { %v1073_v47 = vpop.f32.mrb[8].mxu1 }
 0x29b   : > { %v1075_v48 = vpop.f32.mrb[9].mxu1 }
 0x2f4   : > { %v631_v52 = vpop.permute.xlu1 %630 }
 0x2f5   : > { %v633_v53 = vsub.f32 %v626_v38, %v631_v52 }
 0x2f7   : > { %v634_v54 = vmul.f32 1.442695, %v633_v53 }
 0x2f9   : > { %2116 = vpow2.f32 %v634_v54 }
 0x303   : > { %v2117_v55 = vpop.eup %2116 }
 0x304   : > { %v636_v56 = vadd.f32 1.0, %v2117_v55 }
 0x305   : > { %v816_v12 = vpop.permute.xlu1 %815 }
 0x306   : > { %2118 = vrcp.f32 %v636_v56  ;;  %v896_v14 = vadd.f32 %v895_v41, %v816_v12  ;;  %v898_v17 = vadd.f32 %v897_v42, %v816_v12  ;;  %v1068_v26 = vadd.f32 %v1067_v45, %v816_v12  ;;  %v1931_v45 = vld [vmem:[%s2747_s7 + $0x18] sm:$0xff] }
 0x307   : > { %v1070_v28 = vadd.f32 %v1069_v46, %v816_v12 }
 0x309   : > { %v821_v13 = vpop.permute.xlu1 %820 }
 0x30a   : > { %v902_v18 = vadd.f32 %v901_v43, %v821_v13  ;;  %v904_v19 = vadd.f32 %v903_v44, %v821_v13  ;;  %v1074_v35 = vadd.f32 %v1073_v47, %v821_v13  ;;  %v1076_v36 = vadd.f32 %v1075_v48, %v821_v13  ;;  %v1930_v44 = vld [vmem:[%s2747_s7 + $0x10] sm:$0xff] }
 0x30b   : > { %v2031_v46 = vpack.c.bf16 %v1931_v45, %v1930_v44 }
 0x30d   : > { %2032 = vmatpush3.bf16.msra.mxu1 %v2031_v46 }
 0x310   : > { %v2531_v60 = vpop.eup %2118 }
 0x311   : > { %2049 = vpush %v2531_v60  ;;  %v1078_v62 = vrot.slane %v2531_v60, 1  ;;  %v639_v63 = vsub.f32 1.0, %v2531_v60 }
 0x313   : > { %2051 = vpush %v1078_v62  ;;  %v647_v3 = vrot.slane %v639_v63, %v2534_v61 }
 0x315   : > { %v648_v7 = vcombine.high %v647_v3, %v647_v3  ;;  %v655_v10 = vrot.slane %v647_v3, %v2534_v61 }
 0x317   : > { %v662_v11 = vrot.slane %v648_v7, %v2534_v61  ;;  %666 = vst.msk [vmem:[%s2543_s28] sm:$0x1] %vm665_vm4, %v655_v10  ;;  %v1936_v10 = vld [vmem:[%s2741_s1 + $0x18] sm:$0xff] }
 0x319   : > { %667 = vst.msk [vmem:[%s2543_s28 + $0x2] sm:$0x1] %vm665_vm4, %v662_v11  ;;  %v1928_v11 = vld [vmem:[%s2746_s6 + $0x1] ss:$0 sm:$0xff] }
 0x342   : > { %s2050_s23 = spop %2049 }
 0x343   : > { %v907_v20 = vstv %s2050_s23  ;;  %s1964_s23 = sshll.u32 %s2311_s17, 10 }
 0x344   : > { %v908_v21 = vmul.f32 %v907_v20, %v896_v14  ;;  %v909_v22 = vmul.f32 %v907_v20, %v898_v17  ;;  %v910_v24 = vmul.f32 %v907_v20, %v902_v18  ;;  %v911_v25 = vmul.f32 %v907_v20, %v904_v19  ;;  %s2052_s22 = spop %2051  ;;  %s2686_s12 = scalar_lea.hbm %s2749_s9, %s1964_s23 }
 0x345   : > { %v1080_v30 = vstv %s2052_s22  ;;  %s2761_s22 = sshll.u32 %s2394_s18, 6 }
 0x346   : > { %v2552_v31 = vadd.f32 %v908_v21, %v2408_v2  ;;  %v2555_v32 = vadd.f32 %v909_v22, %v2412_v4  ;;  %v2558_v33 = vadd.f32 %v910_v24, %v2420_v8  ;;  %v2561_v34 = vadd.f32 %v911_v25, %v2422_v9  ;;  %s379_s27 = scalar_lea.vmem [#allocation5], %s2761_s22 }
 0x347   : > { %v1081_v37 = vmul.f32 %v1080_v30, %v1068_v26  ;;  %v1082_v38 = vmul.f32 %v1080_v30, %v1070_v28  ;;  %v1083_v15 = vmul.f32 %v1080_v30, %v1074_v35  ;;  %v1084_v40 = vmul.f32 %v1080_v30, %v1076_v36  ;;  %s1795_s21 = sshll.u32 %s379_s27, 4  ;;  %s2688_s21 = int_to_ptr.vmem [resolvable:$true] %s1795_s21 }
 0x348   : > { %v1105_v39 = vadd.f32 %v2561_v34, %v2558_v33  ;;  %v2033_v2 = vpack.c.bf16 %v2561_v34, %v2555_v32  ;;  %v1102_v4 = vadd.f32 %v2555_v32, %v2552_v31  ;;  %v2035_v3 = vpack.c.bf16 %v2558_v33, %v2552_v31 }
 0x349   : > { %v2570_v8 = vadd.f32 %v1081_v37, %v2404_v0  ;;  %v2573_v9 = vadd.f32 %v1082_v38, %v2406_v1  ;;  %v2576_v41 = vadd.f32 %v1083_v15, %v2414_v5  ;;  %v2579_v42 = vadd.f32 %v1084_v40, %v2416_v6  ;;  %v1938_v1 = vld [vmem:[%s2742_s2 + $0x18] sm:$0xff]  ;;  %v1937_v5 = vld [vmem:[%s2742_s2 + $0x10] sm:$0xff] }
 0x34a   : > { %1106 = vadd.xlane.f32.xlu0 %v1105_v39  ;;  %2034 = vmatprep.subr.bf16.mxu0 %v2033_v2  ;;  %v1942_v6 = vld [vmem:[%s2744_s4 + $0x18] sm:$0xff] }
 0x34b   : > { %1103 = vadd.xlane.f32.xlu1 %v1102_v4  ;;  %v1108_v43 = vadd.f32 %v2573_v9, %v2570_v8  ;;  %v1111_v0 = vadd.f32 %v2579_v42, %v2576_v41  ;;  %v2041_v7 = vpack.c.bf16 %v2579_v42, %v2573_v9 }
 0x34f   : > { %1109 = vadd.xlane.f32.xlu1 %v1108_v43 }
 0x353   : > { %1112 = vadd.xlane.f32.xlu1 %v1111_v0 }
 0x360   : > { %1405 = vperm.xlu0 %2114, %v1938_v1  }
 0x364   : > { %1400 = vperm.xlu1 %2115, %v1937_v5   ;;  %1502 = vperm.xlu0 %2114, %v1942_v6   ;;  %v1939_v6 = vld [vmem:[%s2743_s3 + $0x10] sm:$0xff] }
 0x3d7   : > { %v1107_v48 = vpop.xlane.xlu0 %1106 }
 0x3d8   : > { %v1104_v47 = vpop.xlane.xlu1 %1103  ;;  %v1115_v50 = vmul.f32 0.00390625, %v1107_v48 }
 0x3d9   : > { %v1114_v51 = vmul.f32 0.00390625, %v1104_v47 }
 0x3da   : > { %v1140_v54 = vrot.slane %v1115_v50, %v2454_v29  ;;  %v1940_v50 = vld [vmem:[%s2743_s3 + $0x18] sm:$0xff] }
 0x3db   : > { %v1136_v55 = vrot.slane %v1114_v51, %v2451_v27 }
 0x3dc   : > { %v1110_v49 = vpop.xlane.xlu1 %1109 }
 0x3dd   : > { %v1116_v52 = vmul.f32 0.00390625, %v1110_v49  ;;  %v1141_v59 = vsel %vm460_vm1, %v1140_v54, %v1136_v55 }
 0x3df   : > { %v1145_v57 = vrot.slane %v1116_v52, %v2451_v27  ;;  %v1935_v27 = vld [vmem:[%s2741_s1 + $0x10] sm:$0xff]  ;;  %v1406_v22 = vpop.permute.xlu0 %1405  ;;  %v1933_v52 = vld [vmem:[%s2748_s8 + $0x1] ss:$0 sm:$0xff] }
 0x3e0   : > { %v1113_v53 = vpop.xlane.xlu1 %1112 }
 0x3e1   : > { %v1117_v56 = vmul.f32 0.00390625, %v1113_v53 }
 0x3e3   : > { %v1149_v58 = vrot.slane %v1117_v56, %v2454_v29  ;;  %v2043_v29 = vpack.c.bf16 %v2576_v41, %v2570_v8  ;;  %v675_v56 = vrot.slane %v2531_v60, %v2534_v61 }
 0x3e4   : > { %v1401_v20 = vpop.permute.xlu1 %1400 }
 0x3e5   : > { %v1150_v62 = vsel %vm460_vm1, %v1149_v58, %v1145_v57  ;;  %v1941_v57 = vld [vmem:[%s2744_s4 + $0x10] sm:$0xff]  ;;  %v693_v58 = vsub.s32 0, %v2448_v23 }
 0x3e6   : > { %v1151_v63 = vsel %vm471_vm2, %v1150_v62, %v1141_v59  ;;  %v676_v59 = vcombine.high %v675_v56, %v675_v56 }
 0x3e7   : > { %1996 = vmatmul.mubr.msk.f32.vlgmr.msra.gmra.mrb[10].mxu0 %vm473_vm3, %v1151_v63 }
 0x3e8   : > { %2036 = vmatpush1.bf16.msra.mxu0 %v2035_v3  ;;  %1478 = vmatprep.mubr.f32.mxu0 %v2227_v16  ;;  %v690_v63 = vrot.slane %v676_v59, %v2534_v61 }
 0x3e9   : > { %2042 = vmatprep.subr.bf16.mxu0 %v2041_v7 }
 0x3ea   : > { %v698_v3 = vrot.slane %v690_v63, %v693_v58 }
 0x3eb   : > { %1943 = vmatmul.mubr.msk.f32.vlgmr.msra.gmra.mrb[12].mxu0 %vm473_vm3, %v1935_v27 }
 0x3ec   : > { %2044 = vmatpush1.bf16.msra.mxu0 %v2043_v29  ;;  %1484 = vmatprep.mubr.f32.mxu0 %v2227_v16 }
 0x3ef   : > { %1944 = vmatmul.mubr.msk.f32.gmra.mrb[14].mxu0 %vm473_vm3, %v1936_v10 }
 0x3f0   : > { %1666 = vmatprep.mubr.f32.mxu0 %v2227_v16 }
 0x3f3   : > { %1947 = vmatmul.mubr.msk.f32.vlgmr.msra.gmra.mrb[16].mxu0 %vm473_vm3, %v1935_v27 }
 0x3f4   : > { %1672 = vmatprep.mubr.f32.mxu0 %v2227_v16 }
 0x3f7   : > { %1948 = vmatmul.mubr.msk.f32.gmra.mrb[18].mxu0 %vm473_vm3, %v1936_v10 }
 0x4ba   : > { %v1220_v12 = vpop.f32.mrb[10].mxu0 }
 0x4bb   : > { %v1221_v13 = vadd.f32 %v1928_v11, %v1220_v12  ;;  %v1997_v14 = vpop.f32.mrb[11].mxu0 }
 0x4bd   : > { %v1224_v17 = vmax.f32 %v1221_v13, 0.0 }
 0x4be   : > { %v1480_v18 = vpop.f32.mrb[12].mxu0 }
 0x4bf   : > { %2003 = vmatmul.mubr.msk.f32.vlgmr.msra.gmra.mrb[10].mxu1 %vm473_vm3, %v1224_v17  ;;  %v1482_v19 = vpop.f32.mrb[13].mxu0  ;;  %v1481_v21 = vadd.f32 %v1480_v18, %v1401_v20 }
 0x4c0   : > { %1575 = vmatprep.mubr.f32.mxu1 %v2227_v16  ;;  %v1483_v24 = vadd.f32 %v1482_v19, %v1401_v20 }
 0x4c1   : > { %v1491_v35 = vmax.f32 %v1481_v21, 0.0 }
 0x4c2   : > { %v1486_v25 = vpop.f32.mrb[14].mxu0  ;;  %v1492_v37 = vmax.f32 %v1483_v24, 0.0 }
 0x4c3   : > { %v1487_v26 = vadd.f32 %v1486_v25, %v1406_v22  ;;  %v1488_v28 = vpop.f32.mrb[15].mxu0 }
 0x4c4   : > { %v1489_v30 = vadd.f32 %v1488_v28, %v1406_v22 }
 0x4c5   : > { %v1493_v36 = vmax.f32 %v1487_v26, 0.0 }
 0x4c6   : > { %v1494_v38 = vmax.f32 %v1489_v30, 0.0  ;;  %v1668_v39 = vpop.f32.mrb[16].mxu0 }
 0x4c7   : > { %v2039_v2 = vpack.c.bf16 %v1493_v36, %v1491_v35  ;;  %v1670_v4 = vpop.f32.mrb[17].mxu0  ;;  %v1669_v40 = vadd.f32 %v1668_v39, %v1401_v20 }
 0x4c8   : > { %v2037_v15 = vpack.c.bf16 %v1494_v38, %v1492_v37  ;;  %v1671_v43 = vadd.f32 %v1670_v4, %v1401_v20 }
 0x4c9   : > { %v1679_v45 = vmax.f32 %v1669_v40, 0.0  ;;  %v1503_v40 = vpop.permute.xlu0 %1502 }
 0x4ca   : > { %2038 = vmatprep.subr.bf16.mxu1 %v2037_v15  ;;  %v1674_v0 = vpop.f32.mrb[18].mxu0  ;;  %v1680_v47 = vmax.f32 %v1671_v43, 0.0 }
 0x4cb   : > { %v1675_v1 = vadd.f32 %v1674_v0, %v1406_v22  ;;  %2040 = vmatpush1.bf16.msra.mxu1 %v2039_v2  ;;  %v1676_v5 = vpop.f32.mrb[19].mxu0 }
 0x4cc   : > { %v1677_v44 = vadd.f32 %v1676_v5, %v1406_v22 }
 0x4cd   : > { %v1681_v46 = vmax.f32 %v1675_v1, 0.0 }
 0x4ce   : > { %v1682_v48 = vmax.f32 %v1677_v44, 0.0  ;;  %1945 = vmatmul.mubr.msk.f32.vlgmr.msra.gmra.mrb[12].mxu1 %vm473_vm3, %v1939_v6 }
 0x4cf   : > { %v2047_v49 = vpack.c.bf16 %v1681_v46, %v1679_v45  ;;  %1581 = vmatprep.mubr.f32.mxu1 %v2227_v16 }
 0x4d0   : > { %v2045_v51 = vpack.c.bf16 %v1682_v48, %v1680_v47 }
 0x4d2   : > { %1946 = vmatmul.mubr.msk.f32.gmra.mrb[14].mxu1 %vm473_vm3, %v1940_v50  ;;  %2046 = vmatprep.subr.bf16.mxu1 %v2045_v51 }
 0x4d3   : > { %2048 = vmatpush1.bf16.msra.mxu1 %v2047_v49  ;;  %1747 = vmatprep.mubr.f32.mxu1 %v2227_v16 }
 0x4d6   : > { %1949 = vmatmul.mubr.msk.f32.vlgmr.msra.gmra.mrb[16].mxu1 %vm473_vm3, %v1939_v6 }
 0x4d7   : > { %1753 = vmatprep.mubr.f32.mxu1 %v2227_v16  ;;  %v683_v16 = vrot.slane %v675_v56, %v2534_v61 }
 0x4d9   : > { %v694_v62 = vrot.slane %v683_v16, %v693_v58 }
 0x4da   : > { %1950 = vmatmul.mubr.msk.f32.gmra.mrb[18].mxu1 %vm473_vm3, %v1940_v50 }
 0x592   : > { %v1305_v53 = vpop.f32.mrb[10].mxu1 }
 0x593   : > { %v1306_v54 = vadd.f32 %v1933_v52, %v1305_v53  ;;  %v2004_v55 = vpop.f32.mrb[11].mxu1 }
 0x595   : > { %1310 = vrot.lane.b32.xlu1 %v1306_v54, %s2760_s24 }
 0x599   : > { %1497 = vperm.xlu1 %2115, %v1941_v57  }
 0x59d   : > { %699 = vrot.lane.b32.xlu1 %v694_v62, %s2231_s11 }
 0x5a1   : > { %701 = vrot.lane.b32.xlu1 %v698_v3, %s2231_s11  ;;  %v1577_v60 = vpop.f32.mrb[12].mxu1 }
 0x5a2   : > { %v1579_v7 = vpop.f32.mrb[13].mxu1 }
 0x5a5   : > { %v1583_v27 = vpop.f32.mrb[14].mxu1 }
 0x5a6   : > { %v1585_v29 = vpop.f32.mrb[15].mxu1  ;;  %v1584_v43 = vadd.f32 %v1583_v27, %v1503_v40 }
 0x5a7   : > { %v1586_v0 = vadd.f32 %v1585_v29, %v1503_v40 }
 0x5a9   : > { %v1749_v10 = vpop.f32.mrb[16].mxu1 }
 0x5aa   : > { %v1751_v11 = vpop.f32.mrb[17].mxu1 }
 0x5ad   : > { %v1755_v23 = vpop.f32.mrb[18].mxu1 }
 0x5ae   : > { %v1757_v12 = vpop.f32.mrb[19].mxu1  ;;  %v1756_v6 = vadd.f32 %v1755_v23, %v1503_v40 }
 0x5af   : > { %v1758_v48 = vadd.f32 %v1757_v12, %v1503_v40 }
 0x607   : > { %v1311_v13 = vpop.permute.xlu1 %1310 }
 0x608   : > { %v1313_v14 = vsub.f32 %v1306_v54, %v1311_v13 }
 0x60a   : > { %v1314_v17 = vmul.f32 1.442695, %v1313_v14 }
 0x60c   : > { %2120 = vpow2.f32 %v1314_v17 }
 0x616   : > { %v2121_v18 = vpop.eup %2120 }
 0x617   : > { %v1316_v19 = vadd.f32 1.0, %v2121_v18 }
 0x618   : > { %v1498_v20 = vpop.permute.xlu1 %1497 }
 0x619   : > { %2122 = vrcp.f32 %v1316_v19  ;;  %v1578_v1 = vadd.f32 %v1577_v60, %v1498_v20  ;;  %v1580_v5 = vadd.f32 %v1579_v7, %v1498_v20  ;;  %v1750_v49 = vadd.f32 %v1749_v10, %v1498_v20 }
 0x61a   : > { %v1752_v50 = vadd.f32 %v1751_v11, %v1498_v20 }
 0x61c   : > { %v700_v21 = vpop.permute.xlu1 %699 }
 0x61d   : > { %706 = vst.msk [vmem:[%s2543_s28] sm:$0x1] %vm705_vm5, %v700_v21 }
 0x620   : > { %v702_v22 = vpop.permute.xlu1 %701 }
 0x621   : > { %707 = vst.msk [vmem:[%s2543_s28 + $0x2] sm:$0x1] %vm705_vm5, %v702_v22 }
 0x623   : > { %v2123_v24 = vpop.eup %2122 }
 0x624   : > { %2053 = vpush %v2123_v24  ;;  %v1760_v25 = vrot.slane %v2123_v24, 1  ;;  %v1354_v26 = vrot.slane %v2123_v24, %v2534_v61  ;;  %v1319_v28 = vsub.f32 1.0, %v2123_v24 }
 0x626   : > { %2055 = vpush %v1760_v25  ;;  %v1362_v30 = vrot.slane %v1354_v26, %v2534_v61  ;;  %v1355_v35 = vcombine.high %v1354_v26, %v1354_v26  ;;  %v1327_v36 = vrot.slane %v1319_v28, %v2534_v61 }
 0x628   : > { %v1373_v37 = vrot.slane %v1362_v30, %v693_v58  ;;  %v1369_v38 = vrot.slane %v1355_v35, %v2534_v61  ;;  %v1328_v39 = vcombine.high %v1327_v36, %v1327_v36  ;;  %v1335_v2 = vrot.slane %v1327_v36, %v2534_v61 }
 0x62a   : > { %1378 = vrot.lane.b32.xlu0 %v1373_v37, %s2231_s11  ;;  %v1342_v4 = vrot.slane %v1328_v39, %v2534_v61  ;;  %1345 = vst.msk [vmem:[%s2543_s28 + $0x1] sm:$0x1] %vm665_vm4, %v1335_v2  ;;  %v1377_v15 = vrot.slane %v1369_v38, %v693_v58 }
 0x62c   : > { %1346 = vst.msk [vmem:[%s2543_s28 + $0x3] sm:$0x1] %vm665_vm4, %v1342_v4 }
 0x62e   : > { %1380 = vrot.lane.b32.xlu0 %v1377_v15, %s2231_s11  ;;  %s2154_s11 = scalar_lea.vmem %s2688_s21, 1024 }
 0x62f   : > { %p2155_p11 = scmp.ne.s32.totalorder %s2688_s21, %s2154_s11 }
 0x631   : > { %p2156_p13 = pnand %p2155_p11, %p2762_p12 }
 0x633   : > { %p2157_p8 = pneg %p2156_p13 }
 0x655   : > { %s2054_s30 = spop %2053 }
 0x656   : > { %v1589_v44 = vstv %s2054_s30  ;;  %s2232_s30 = smov [#allocation5]  }
 0x657   : > { %v1590_v45 = vmul.f32 %v1589_v44, %v1578_v1  ;;  %v1591_v46 = vmul.f32 %v1589_v44, %v1580_v5  ;;  %v1592_v61 = vmul.f32 %v1589_v44, %v1584_v43  ;;  %v1593_v47 = vmul.f32 %v1589_v44, %v1586_v0  ;;  %s2056_s29 = spop %2055 }
 0x658   : > { %v1762_v51 = vstv %s2056_s29  ;;  %s2158_s29 = sshll.u32 %s2232_s30, 4  ;;  %s2159_s29 = int_to_ptr.vmem [resolvable:$false] %s2158_s29 }
 0x659   : > { %v1594_v52 = vadd.f32 %v1590_v45, %v2552_v31  ;;  %v1595_v53 = vadd.f32 %v1591_v46, %v2555_v32  ;;  %v1596_v54 = vadd.f32 %v1592_v61, %v2558_v33  ;;  %v1597_v55 = vadd.f32 %v1593_v47, %v2561_v34  ;;  %s2160_s23 = scalar_lea.vmem %s2159_s29, 2048  ;;  %p2161_p10 = scmp.lt.s32.totalorder %s2688_s21, %s2159_s29 }
 0x65a   : > { %v1763_v56 = vmul.f32 %v1762_v51, %v1750_v49  ;;  %v1764_v57 = vmul.f32 %v1762_v51, %v1752_v50  ;;  %v1765_v16 = vmul.f32 %v1762_v51, %v1756_v6  ;;  %v1766_v58 = vmul.f32 %v1762_v51, %v1758_v48  ;;  %p2162_p0 = scmp.lt.s32.totalorder %s2160_s23, %s2154_s11 }
 0x65b   : > { %1598 = vst [vmem:[%s379_s27] sm:$0xff] %v1594_v52  ;;  %1599 = vst [vmem:[%s379_s27 + $0x8] sm:$0xff] %v1595_v53 }
 0x65c   : > { %1600 = vst [vmem:[%s379_s27 + $0x10] sm:$0xff] %v1596_v54  ;;  %1601 = vst [vmem:[%s379_s27 + $0x18] sm:$0xff] %v1597_v55  ;;  %v1767_v31 = vadd.f32 %v1763_v56, %v2570_v8  ;;  %v1768_v32 = vadd.f32 %v1764_v57, %v2573_v9  ;;  %v1769_v33 = vadd.f32 %v1765_v16, %v2576_v41  ;;  %p2163_p2 = por %p2162_p0, %p2161_p10 }
 0x65d   : > { %v1770_v34 = vadd.f32 %v1766_v58, %v2579_v42 }
 0x65e   : > { %1951 = vst [vmem:[%s379_s27 + $0x20] sm:$0xff] %v1767_v31  ;;  %1952 = vst [vmem:[%s379_s27 + $0x28] sm:$0xff] %v1768_v32  ;;  %p2164_p4 = pnand %p2163_p2, %p2157_p8 }
 0x65f   : > { %1953 = vst [vmem:[%s379_s27 + $0x30] sm:$0xff] %v1769_v33  ;;  %1954 = vst [vmem:[%s379_s27 + $0x38] sm:$0xff] %v1770_v34 }
 0x660   : > { %2167 = shalt.err (!%p2164_p4)
}
 0x661   : > { %s2168_s22 = scalar_lea.hbm %s2686_s12, 1024  ;;  %s2172_s24 = scalar_lea.hbm %s2749_s9, 2048 }
 0x662   : > { %p2169_p5 = scmp.ne.s32.totalorder %s2686_s12, %s2168_s22  ;;  %p2173_p1 = scmp.lt.u32.totalorder %s2686_s12, %s2749_s9 }
 0x663   : > { %p2174_p3 = scmp.lt.u32.totalorder %s2172_s24, %s2168_s22  ;;  %p2176_p11 = scmp.lt.u32.totalorder %s2168_s22, %s2686_s12 }
 0x664   : > { %p2170_p7 = pnand %p2169_p5, %p2762_p12 }
 0x665   : > { %p2175_p6 = por %p2174_p3, %p2173_p1 }
 0x666   : > { %p2171_p9 = pneg %p2170_p7 }
 0x667   : > { %p2177_p13 = por %p2176_p11, %p2175_p6 }
 0x669   : > { %p2178_p8 = pnand %p2177_p13, %p2171_p9 }
 0x66b   : > { %2181 = shalt.err (!%p2178_p8)
}
 0x66c   : > { %s2233_s11 = smov 256   ;;  %s2234_s23 = smov 16  }
 0x66d   : > { %2059 = dma.vmem_to_hbm [thread:$0]  (%p2762_p12), %s2688_s21, 1024, %s2686_s12, %s1776_s20, %s2233_s11, %s2233_s11, %s2234_s23  }
 0x69c   : > { %v1379_v8 = vpop.permute.xlu0 %1378 }
 0x69d   : > { %1384 = vst.msk [vmem:[%s2543_s28 + $0x1] sm:$0x1] %vm705_vm5, %v1379_v8 }
 0x6a0   : > { %v1381_v9 = vpop.permute.xlu0 %1380 }
 0x6a1   : > { %1385 = vst.msk [vmem:[%s2543_s28 + $0x3] sm:$0x1] %vm705_vm5, %v1381_v9 }
 0x6a2 PF: > { %s1814_s22 = sand.u32 1, %s2208_s13   ;;  %p2763_p10 = scmp.ne.s32.totalorder %s2758_s26, 0 }
 0x6a3   : > { %p2764_p0 = scmp.ge.s32.totalorder %s2220_s16, 2  ;;  %s1815_s27 = scalar_lea.sflag [#allocation4], %s1814_s22 }
 0x6a5   : > { %p2066_p2 = pnand %p2764_p0, %p2763_p10 }
 0x6a7   : > { %2203 = dma.done.wait (!%p2066_p2), %s1815_s27, 1024  }
 0x6a8   : > { %2205 = vsyncadd (!%p2066_p2), %s1815_s27, 4294966272  ;;  %s2765_s25 = sld [smem:[#allocation8_spill]]  ;;  %p24_p12 = scmp.ge.s32.totalorder %s2315_s19, 4  }
 0x6a9   : > { %s2766_s13 = smov %s2212_s14  ;;  %s2767_s14 = smov %s2216_s15 }
 0x6aa   : > { %s2769_s16 = smov %s2315_s19  ;;  %26 = sbr.rel (!%p24_p12) target bundleno = 5 (0x5), region = 122 }
 0x6ae   : > { %s2768_s15 = smov %s2765_s25 }
 0x6b1   :  { %1828 = vsyncpa [#allocation3], 1 }
 0x6b2   :  { %1830 = vsyncpa [#allocation3 + $0x1], 1 }
 0x6b3   :  { %1831 = vsyncpa [#allocation4], 1 }
 0x6b4   :  { %1833 = vsyncpa [#allocation4 + $0x1], 1 }

</bundles_post_ra>
